<compile_context>
chip_gen: v6e
topology: v6e:2x2x1
jax: 0.10.0
libtpu: 0.0.40
codegen_flags: <defaults>
</compile_context>

<pallas_src>
import math

import jax
import jax.numpy as jnp
from jax.experimental import pallas as pl
from jax.experimental.pallas import tpu as pltpu


def _round_up(v: int, m: int) -> int:
    return ((v + m - 1) // m) * m


# -----------------------------------------------------------------------------
# Kernel 1: one-time weight masking + transpose (hoisted out of the row loop).
#   Reads W in natural (O, K) layout, masks with the per-output-row threshold
#   (compare in f32), transposes the tile and writes bf16 masked_wT[k, o].
# -----------------------------------------------------------------------------
def mask_transpose_kernel(w_ref, thr_ref, mwT_ref):
    w = w_ref[...].astype(jnp.float32)      # (to_m, K_pad)
    thr = thr_ref[...].astype(jnp.float32)  # (to_m, 1) -> broadcasts along K
    # Same BinaryStep form as the torch module; single select, no astype/mul.
    masked = jnp.where(jnp.abs(w) - thr > 0, w, jnp.zeros_like(w))
    # f32 transpose (XLU), then pack to bf16 for the MXU / halved HBM+VMEM.
    mwT_ref[...] = masked.T.astype(jnp.bfloat16)  # (K_pad, to_m)


# -----------------------------------------------------------------------------
# Kernel 2: tiled matmul + bias against the pre-masked bf16 weight.
#   y[i, j] = x[i, :] @ masked_wT[:, j] + bias[j]   (f32 accumulate)
# -----------------------------------------------------------------------------
def matmul_bias_kernel(x_ref, mwT_ref, b_ref, o_ref):
    y = jnp.dot(x_ref[...], mwT_ref[...], preferred_element_type=jnp.float32)
    o_ref[...] = (y + b_ref[...]).astype(o_ref.dtype)  # f32 bias into f32 acc


def prepare_masked_weight(weight, threshold, *, to_m=128):
    """One-time mask + transpose + bf16 cast.

    weight: (out, in) -> returns (masked_wT_bf16 (K_pad, O_pad), K_pad, O_pad).
    Inference callers with static weights should call this once and reuse it.
    """
    O, K = weight.shape
    K_pad = _round_up(K, 128)
    O_pad = _round_up(O, 128)

    # Pads are no-ops when the dims are already 128-aligned.  Padded rows get
    # weight 0 / threshold 0 -> mask 0; padded K columns are 0 -> contribute 0.
    w_p = jnp.pad(weight.astype(jnp.float32), ((0, O_pad - O), (0, K_pad - K)))
    thr_p = jnp.pad(threshold.astype(jnp.float32).reshape(O, 1),
                    ((0, O_pad - O), (0, 0)))

    masked_wT = pl.pallas_call(
        mask_transpose_kernel,
        out_shape=jax.ShapeDtypeStruct((K_pad, O_pad), jnp.bfloat16),
        grid=(O_pad // to_m,),
        in_specs=[
            pl.BlockSpec((to_m, K_pad), lambda i: (i, 0)),  # W row-tile (O,K)
            pl.BlockSpec((to_m, 1), lambda i: (i, 0)),      # threshold column
        ],
        # Swapped index_map: tile i of W's rows lands at column-block i of W^T.
        out_specs=pl.BlockSpec((K_pad, to_m), lambda i: (0, i)),
        compiler_params=pltpu.CompilerParams(
            dimension_semantics=("parallel",),
            vmem_limit_bytes=48 * 1024 * 1024,  # v7x-safe headroom
        ),
    )(w_p, thr_p)
    return masked_wT, K_pad, O_pad


def masked_linear(x, weight, threshold, bias, *, tm=256, to=None):
    """MaskedLinear forward (spar_wei=True path).

    x: (M, in_features); weight: (out, in); threshold: (out,); bias: (out,).
    Returns (M, out_features) in x.dtype.
    """
    M, K = x.shape
    O, K2 = weight.shape
    assert K == K2

    # --- one-time mask/transpose pass (NOT recomputed per row tile) ----------
    masked_wT, K_pad, O_pad = prepare_masked_weight(weight, threshold)

    # Row tile: 256 matches the 256-wide v6e/v7x MXU; clamp for small M.
    tm_eff = min(tm, _round_up(M, 128))
    M_pad = _round_up(M, tm_eff)

    # Output tile: keep the bf16 weight tile <= ~4 MiB per buffer so the
    # pipelined working set stays far under v7x's 64 MiB/TC; must divide O_pad.
    if to is None:
        budget = 4 * 1024 * 1024
        to = max(128, min(O_pad, (budget // (K_pad * 2)) // 128 * 128))
    to = min(to, O_pad)
    while O_pad % to != 0:   # O_pad is a multiple of 128 -> terminates at 128
        to -= 128

    # bf16 activations for the MXU; f32 bias added to the f32 accumulator.
    x_p = jnp.pad(x, ((0, M_pad - M), (0, K_pad - K))).astype(jnp.bfloat16)
    b_p = jnp.pad(bias.astype(jnp.float32).reshape(1, O),
                  ((0, 0), (0, O_pad - O)))

    n_o = O_pad // to
    n_m = M_pad // tm_eff

    # Grid order (O-tiles outer, M-tiles inner): each weight tile is fetched
    # from HBM exactly once (it is the big operand); the small x tile is
    # re-fetched per O tile.  Both axes are independent -> "parallel".
    out = pl.pallas_call(
        matmul_bias_kernel,
        out_shape=jax.ShapeDtypeStruct((M_pad, O_pad), x.dtype),
        grid=(n_o, n_m),
        in_specs=[
            pl.BlockSpec((tm_eff, K_pad), lambda j, i: (i, 0)),  # x row-tile
            pl.BlockSpec((K_pad, to), lambda j, i: (0, j)),      # masked W^T col-tile
            pl.BlockSpec((1, to), lambda j, i: (0, j)),          # bias slice
        ],
        out_specs=pl.BlockSpec((tm_eff, to), lambda j, i: (i, j)),
        compiler_params=pltpu.CompilerParams(
            dimension_semantics=("parallel", "parallel"),
            vmem_limit_bytes=48 * 1024 * 1024,  # fits v7x's 64 MiB/TC budget
        ),
    )(x_p, masked_wT, b_p)

    return out[:M, :O]


def masked_linear_ref(x, weight, threshold, bias):
    mask = (jnp.abs(weight) - threshold[:, None] > 0).astype(weight.dtype)
    return x @ (weight * mask).T + bias[None, :]


if __name__ == "__main__":
    key = jax.random.PRNGKey(0)
    k_x, k_w, k_b = jax.random.split(key, 3)

    in_features = 32
    out_features = 32
    rows = 16  # e.g. batch=2 x 8 nodes, flattened

    # Deterministic parameter init mirroring reset_parameters():
    #   kaiming_uniform_(weight, a=sqrt(5)) -> U(-1/sqrt(fan_in), 1/sqrt(fan_in))
    fan_in = in_features
    bound = 1.0 / math.sqrt(fan_in)
    weight = jax.random.uniform(
        k_w, (out_features, in_features), jnp.float32, -bound, bound)
    bias = jax.random.uniform(k_b, (out_features,), jnp.float32, -bound, bound)
    # Module init fills threshold with 0.0 (mask == all ones); use a small
    # nonzero threshold here so the BinaryStep masking path is exercised.
    threshold = jnp.full((out_features,), 0.05, jnp.float32)

    x = jax.random.normal(k_x, (rows, in_features), jnp.float32)

    y = masked_linear(x, weight, threshold, bias)
    y = jax.block_until_ready(y)

    y_ref = masked_linear_ref(x, weight, threshold, bias)
    assert y.shape == (rows, out_features)
    # bf16 MXU operands -> compare against the f32 reference at bf16 tolerance.
    assert jnp.allclose(y, y_ref, atol=3e-2, rtol=3e-2), "mismatch vs reference"

    # TODO(synk): BinaryStep's straight-through backward (grad passes through
    # the hard mask) is a training-time autograd rule, not part of this forward
    # kernel.
    print("KERNEL_OK")
</pallas_src>

<mosaic_0001>
module attributes {stable_mosaic.version = 11 : i64} {
  func.func @mask_transpose_kernel(%arg0: i32, %arg1: memref<128x128xf32, #tpu.memory_space<vmem>>, %arg2: memref<128x1xf32, #tpu.memory_space<vmem>>, %arg3: memref<128x128xbf16, #tpu.memory_space<vmem>>) attributes {dimension_semantics = [#tpu.dimension_semantics<parallel>], iteration_bounds = array<i64: 1>, scalar_prefetch = 0 : i64, scratch_operands = 0 : i64, tpu.core_type = #tpu.core_type<tc>, window_params = [{transform_indices = @transform_0, window_bounds = array<i64: 128, 128>}, {transform_indices = @transform_1, window_bounds = array<i64: 128, 1>}, {transform_indices = @transform_2, window_bounds = array<i64: 128, 128>}]} {
    %c0 = arith.constant 0 : index
    %c0_0 = arith.constant 0 : index
    %0 = vector.load %arg1[%c0, %c0_0] : memref<128x128xf32, #tpu.memory_space<vmem>>, vector<128x128xf32>
    %c0_1 = arith.constant 0 : index
    %c0_2 = arith.constant 0 : index
    %1 = vector.load %arg2[%c0_1, %c0_2] : memref<128x1xf32, #tpu.memory_space<vmem>>, vector<128x1xf32>
    %2 = math.absf %0 : vector<128x128xf32>
    %3 = vector.broadcast %1 : vector<128x1xf32> to vector<128x128xf32>
    %4 = arith.subf %2, %3 : vector<128x128xf32>
    %cst = arith.constant 0.000000e+00 : f32
    %5 = vector.broadcast %cst : f32 to vector<128x128xf32>
    %6 = arith.cmpf ogt, %4, %5 : vector<128x128xf32>
    %cst_3 = arith.constant 0.000000e+00 : f32
    %7 = vector.broadcast %cst_3 : f32 to vector<128x128xf32>
    %8 = arith.select %6, %0, %7 : vector<128x128xi1>, vector<128x128xf32>
    %9 = tpu.transpose %8, [1, 0] : vector<128x128xf32> -> vector<128x128xf32>
    %10 = arith.truncf %9 : vector<128x128xf32> to vector<128x128xbf16>
    %c0_4 = arith.constant 0 : index
    %c0_5 = arith.constant 0 : index
    %11 = vector.load %arg3[%c0_4, %c0_5] : memref<128x128xbf16, #tpu.memory_space<vmem>>, vector<128x128xbf16>
    tpu.vector_store %arg3[%c0_4, %c0_5], %10 {strides = array<i32>} : memref<128x128xbf16, #tpu.memory_space<vmem>>, vector<128x128xbf16>,
    return
  }
  func.func @transform_0(%arg0: i32) -> (i32, i32) {
    %c0_i32 = arith.constant 0 : i32
    %c0_i32_0 = arith.constant 0 : i32
    return %arg0, %c0_i32 : i32, i32
  }
  func.func @transform_1(%arg0: i32) -> (i32, i32) {
    %c0_i32 = arith.constant 0 : i32
    %c0_i32_0 = arith.constant 0 : i32
    return %arg0, %c0_i32 : i32, i32
  }
  func.func @transform_2(%arg0: i32) -> (i32, i32) {
    %c0_i32 = arith.constant 0 : i32
    %c0_i32_0 = arith.constant 0 : i32
    return %c0_i32, %arg0 : i32, i32
  }
}

</mosaic_0001>

<bundles_post_ra>
// kernel: tpu_custom_call.1
= control target key start
LH: loop header
LB: loop body
LE: loop exit
PB: predicated region body
PF: predicated region fallthrough
CT: control target
= control target key end

     0   :  { %v423_v2 = vmov 0   ;;  %s541_s0 = inlined_call_operand.vmem [shape: f32[128,128], index: 0, kind: input, shape index: {}]   ;;  %s542_s1 = inlined_call_operand.vmem [shape: f32[128,1], index: 1, kind: input, shape index: {}]   ;;  %s543_s2 = inlined_call_operand.hbm [shape: bf16[128,128], index: 2, kind: output, shape index: {}]  }
   0x1   :  { %v30_v0 = vld [vmem:[%s542_s1 + $0x10] sm:$0xff]  ;;  %v28_v1 = vld [vmem:[%s542_s1] sm:$0xff]  ;;  %400 = vset.pattern.permute.xlu1 %v423_v2  ;;  %399 = vset.pattern.permute.xlu0 %v423_v2  ;;  %v31_v3 = vld [vmem:[%s542_s1 + $0x18] sm:$0xff] }
   0x2   :  { %72 = vperm.xlu1 %400, %v30_v0   ;;  %62 = vperm.xlu0 %399, %v28_v1   ;;  %v29_v4 = vld [vmem:[%s542_s1 + $0x8] sm:$0xff]  ;;  %v32_v6 = vld [vmem:[%s542_s1 + $0x20] sm:$0xff] }
   0x3   :  { %v33_v5 = vld [vmem:[%s542_s1 + $0x28] sm:$0xff] }
   0x6   :  { %77 = vperm.xlu1 %400, %v31_v3   ;;  %67 = vperm.xlu0 %399, %v29_v4  }
   0x7   :  { %7 = vsyncpa [#allocation3], 0  ;;  %v35_v7 = vld [vmem:[%s542_s1 + $0x38] sm:$0xff]  ;;  %v34_v8 = vld [vmem:[%s542_s1 + $0x30] sm:$0xff] }
   0x8   :  { %v37_v9 = vld [vmem:[%s542_s1 + $0x48] sm:$0xff]  ;;  %v36_v10 = vld [vmem:[%s542_s1 + $0x40] sm:$0xff]  ;;  %v39_v11 = vld [vmem:[%s542_s1 + $0x58] sm:$0xff] }
   0x9   :  { %v38_v12 = vld [vmem:[%s542_s1 + $0x50] sm:$0xff]  ;;  %v41_v13 = vld [vmem:[%s542_s1 + $0x68] sm:$0xff]  ;;  %v40_v14 = vld [vmem:[%s542_s1 + $0x60] sm:$0xff] }
   0xa   :  { %87 = vperm.xlu1 %400, %v33_v5   ;;  %82 = vperm.xlu0 %399, %v32_v6   ;;  %v43_v15 = vld [vmem:[%s542_s1 + $0x78] sm:$0xff]  ;;  %v42_v16 = vld [vmem:[%s542_s1 + $0x70] sm:$0xff]  ;;  %v12_v17 = vld [vmem:[%s541_s0] sm:$0xff] }
   0xb   :  { %v14_v18 = vld [vmem:[%s541_s0 + $0x10] sm:$0xff]  ;;  %v44_v19 = vand.u32 2147483647, %v12_v17  ;;  %v13_v20 = vld [vmem:[%s541_s0 + $0x8] sm:$0xff]  ;;  %v15_v26 = vld [vmem:[%s541_s0 + $0x18] sm:$0xff] }
   0xc   :  { %v46_v21 = vand.u32 2147483647, %v14_v18  ;;  %v45_v24 = vand.u32 2147483647, %v13_v20  ;;  %v47_v30 = vand.u32 2147483647, %v15_v26 }
   0xd   :  { %v16_v32 = vld [vmem:[%s541_s0 + $0x20] sm:$0xff]  ;;  %v17_v38 = vld [vmem:[%s541_s0 + $0x28] sm:$0xff]  ;;  %v18_v43 = vld [vmem:[%s541_s0 + $0x30] sm:$0xff] }
   0xe   :  { %97 = vperm.xlu1 %400, %v35_v7   ;;  %92 = vperm.xlu0 %399, %v34_v8   ;;  %v48_v36 = vand.u32 2147483647, %v16_v32  ;;  %v49_v40 = vand.u32 2147483647, %v17_v38  ;;  %v50_v46 = vand.u32 2147483647, %v18_v43 }
   0xf   :  { %v19_v47 = vld [vmem:[%s541_s0 + $0x38] sm:$0xff]  ;;  %v20_v53 = vld [vmem:[%s541_s0 + $0x40] sm:$0xff]  ;;  %v21_v57 = vld [vmem:[%s541_s0 + $0x48] sm:$0xff] }
  0x10   :  { %v51_v50 = vand.u32 2147483647, %v19_v47  ;;  %v52_v56 = vand.u32 2147483647, %v20_v53  ;;  %v53_v60 = vand.u32 2147483647, %v21_v57 }
  0x11   :  { %v22_v63 = vld [vmem:[%s541_s0 + $0x50] sm:$0xff]  ;;  %v23_v3 = vld [vmem:[%s541_s0 + $0x58] sm:$0xff] }
  0x12   :  { %107 = vperm.xlu1 %400, %v37_v9   ;;  %102 = vperm.xlu0 %399, %v36_v10   ;;  %v54_v2 = vand.u32 2147483647, %v22_v63  ;;  %v55_v6 = vand.u32 2147483647, %v23_v3  ;;  %v24_v9 = vld [vmem:[%s541_s0 + $0x60] sm:$0xff] }
  0x16   :  { %117 = vperm.xlu1 %400, %v39_v11   ;;  %112 = vperm.xlu0 %399, %v38_v12   ;;  %v56_v12 = vand.u32 2147483647, %v24_v9 }
  0x1a   :  { %127 = vperm.xlu1 %400, %v41_v13   ;;  %122 = vperm.xlu0 %399, %v40_v14   ;;  %v25_v13 = vld [vmem:[%s541_s0 + $0x68] sm:$0xff] }
  0x1e   :  { %137 = vperm.xlu1 %400, %v43_v15   ;;  %132 = vperm.xlu0 %399, %v42_v16   ;;  %v57_v16 = vand.u32 2147483647, %v25_v13 }
  0x7d   :  { %v63_v22 = vpop.permute.xlu0 %62  ;;  %v73_v25 = vpop.permute.xlu1 %72 }
  0x7e   :  { %v140_v23 = vsub.f32 %v44_v19, %v63_v22  ;;  %v142_v27 = vsub.f32 %v46_v21, %v73_v25  ;;  %v26_v19 = vld [vmem:[%s541_s0 + $0x70] sm:$0xff] }
  0x7f   :  { %v58_v22 = vand.u32 2147483647, %v26_v19 }
  0x80   :  { %vm156_vm0 = vcmp.gt.f32.partialorder %v140_v23, 0.0  ;;  %vm158_vm1 = vcmp.gt.f32.partialorder %v142_v27, 0.0  ;;  %v27_v23 = vld [vmem:[%s541_s0 + $0x78] sm:$0xff]  ;;  %s424_s0 = smov [#allocation2]  }
  0x81   :  { %v68_v28 = vpop.permute.xlu0 %67  ;;  %v172_v29 = vsel %vm156_vm0, %v12_v17, 0.0  ;;  %v78_v33 = vpop.permute.xlu1 %77  ;;  %v174_v37 = vsel %vm158_vm1, %v14_v18, 0.0  ;;  %s305_s16 = sshll.u32 %s424_s0, 4  ;;  %s306_s16 = int_to_ptr.vmem [resolvable:$true] %s305_s16 }
  0x82   :  { %v141_v31 = vsub.f32 %v45_v24, %v68_v28  ;;  %188 = vxpose.xlu0.b32.start [1/16] %v172_v29, 128  ;;  %v143_v35 = vsub.f32 %v47_v30, %v78_v33  ;;  %s401_s17 = scalar_lea.vmem %s306_s16, 1024  ;;  %p406_p1 = scmp.lt.s32.totalorder %s306_s16, %s306_s16 }
  0x83   :  { %p402_p0 = scmp.ne.s32.totalorder %s306_s16, %s401_s17  ;;  %p407_p2 = scmp.lt.s32.totalorder %s401_s17, %s401_s17 }
  0x84   :  { %vm157_vm2 = vcmp.gt.f32.partialorder %v141_v31, 0.0  ;;  %vm159_vm3 = vcmp.gt.f32.partialorder %v143_v35, 0.0 }
  0x85   :  { %v173_v34 = vsel %vm157_vm2, %v13_v20, 0.0  ;;  %v83_v39 = vpop.permute.xlu0 %82  ;;  %v88_v42 = vpop.permute.xlu1 %87  ;;  %v175_v44 = vsel %vm159_vm3, %v15_v26, 0.0  ;;  %v59_v26 = vand.u32 2147483647, %v27_v23  ;;  %p408_p3 = por %p407_p2, %p406_p1 }
  0x86   :  { %189 = vxpose.xlu0.b32.cont [2/16] %v173_v34, 128  ;;  %v144_v41 = vsub.f32 %v48_v36, %v83_v39  ;;  %v145_v45 = vsub.f32 %v49_v40, %v88_v42 }
  0x87   :  { %p409_p4 = pnand %p408_p3, %p402_p0 }
  0x88   :  { %vm160_vm4 = vcmp.gt.f32.partialorder %v144_v41, 0.0  ;;  %vm161_vm5 = vcmp.gt.f32.partialorder %v145_v45, 0.0 }
  0x89   :  { %v93_v48 = vpop.permute.xlu0 %92  ;;  %v176_v49 = vsel %vm160_vm4, %v16_v32, 0.0  ;;  %v98_v52 = vpop.permute.xlu1 %97  ;;  %v177_v54 = vsel %vm161_vm5, %v17_v38, 0.0 }
  0x8a   :  { %190 = vxpose.xlu0.b32.cont [3/16] %v174_v37, 128  ;;  %v146_v51 = vsub.f32 %v50_v46, %v93_v48  ;;  %v147_v55 = vsub.f32 %v51_v50, %v98_v52 }
  0x8c   :  { %vm162_vm6 = vcmp.gt.f32.partialorder %v146_v51, 0.0  ;;  %vm163_vm7 = vcmp.gt.f32.partialorder %v147_v55, 0.0 }
  0x8d   :  { %v103_v58 = vpop.permute.xlu0 %102  ;;  %v178_v59 = vsel %vm162_vm6, %v18_v43, 0.0  ;;  %v108_v62 = vpop.permute.xlu1 %107  ;;  %v179_v0 = vsel %vm163_vm7, %v19_v47, 0.0 }
  0x8e   :  { %191 = vxpose.xlu0.b32.cont [4/16] %v175_v44, 128  ;;  %v148_v61 = vsub.f32 %v52_v56, %v103_v58  ;;  %v149_v1 = vsub.f32 %v53_v60, %v108_v62 }
  0x90   :  { %vm164_vm8 = vcmp.gt.f32.partialorder %v148_v61, 0.0  ;;  %vm165_vm9 = vcmp.gt.f32.partialorder %v149_v1, 0.0 }
  0x91   :  { %v113_v4 = vpop.permute.xlu0 %112  ;;  %v180_v5 = vsel %vm164_vm8, %v20_v53, 0.0  ;;  %v118_v8 = vpop.permute.xlu1 %117  ;;  %v181_v10 = vsel %vm165_vm9, %v21_v57, 0.0 }
  0x92   :  { %192 = vxpose.xlu0.b32.cont [5/16] %v176_v49, 128  ;;  %v150_v7 = vsub.f32 %v54_v2, %v113_v4  ;;  %v151_v11 = vsub.f32 %v55_v6, %v118_v8 }
  0x94   :  { %vm166_vm10 = vcmp.gt.f32.partialorder %v150_v7, 0.0  ;;  %vm167_vm11 = vcmp.gt.f32.partialorder %v151_v11, 0.0 }
  0x95   :  { %v123_v14 = vpop.permute.xlu0 %122  ;;  %v182_v15 = vsel %vm166_vm10, %v22_v63, 0.0  ;;  %v128_v18 = vpop.permute.xlu1 %127  ;;  %v183_v20 = vsel %vm167_vm11, %v23_v3, 0.0 }
  0x96   :  { %193 = vxpose.xlu0.b32.cont [6/16] %v177_v54, 128  ;;  %v152_v17 = vsub.f32 %v56_v12, %v123_v14  ;;  %v153_v21 = vsub.f32 %v57_v16, %v128_v18 }
  0x98   :  { %vm168_vm12 = vcmp.gt.f32.partialorder %v152_v17, 0.0  ;;  %vm169_vm13 = vcmp.gt.f32.partialorder %v153_v21, 0.0 }
  0x99   :  { %v133_v24 = vpop.permute.xlu0 %132  ;;  %v184_v25 = vsel %vm168_vm12, %v24_v9, 0.0  ;;  %v138_v28 = vpop.permute.xlu1 %137  ;;  %v185_v29 = vsel %vm169_vm13, %v25_v13, 0.0 }
  0x9a   :  { %194 = vxpose.xlu0.b32.cont [7/16] %v178_v59, 128  ;;  %v154_v27 = vsub.f32 %v58_v22, %v133_v24  ;;  %v155_v30 = vsub.f32 %v59_v26, %v138_v28 }
  0x9c   :  { %vm170_vm14 = vcmp.gt.f32.partialorder %v154_v27, 0.0  ;;  %vm171_vm15 = vcmp.gt.f32.partialorder %v155_v30, 0.0 }
  0x9d   :  { %v186_v31 = vsel %vm170_vm14, %v26_v19, 0.0  ;;  %v187_v32 = vsel %vm171_vm15, %v27_v23, 0.0 }
  0x9e   :  { %195 = vxpose.xlu0.b32.cont [8/16] %v179_v0, 128 }
  0xa2   :  { %196 = vxpose.xlu0.b32.cont [9/16] %v180_v5, 128 }
  0xa6   :  { %197 = vxpose.xlu0.b32.cont [10/16] %v181_v10, 128 }
  0xaa   :  { %198 = vxpose.xlu0.b32.cont [11/16] %v182_v15, 128 }
  0xae   :  { %199 = vxpose.xlu0.b32.cont [12/16] %v183_v20, 128 }
  0xb2   :  { %200 = vxpose.xlu0.b32.cont [13/16] %v184_v25, 128 }
  0xb6   :  { %201 = vxpose.xlu0.b32.cont [14/16] %v185_v29, 128 }
  0xba   :  { %202 = vxpose.xlu0.b32.cont [15/16] %v186_v31, 128 }
  0xbe   :  { %203 = vxpose.xlu0.b32.end [16/16] %v187_v32, 128 }
  0xfe   :  { %v204_v33 = vpop.trf.xlu0 }
 0x102   :  { %v205_v34 = vpop.trf.xlu0 }
 0x103   :  { %v351_v35 = vpack.c.bf16 %v205_v34, %v204_v33 }
 0x105   :  { %352 = vst [vmem:[#allocation2] sm:$0xff] %v351_v35  }
 0x106   :  { %v206_v36 = vpop.trf.xlu0 }
 0x10a   :  { %v207_v37 = vpop.trf.xlu0 }
 0x10b   :  { %v356_v38 = vpack.c.bf16 %v207_v37, %v206_v36 }
 0x10d   :  { %388 = vst [vmem:[#allocation2 + $0x8] sm:$0xff] %v356_v38  }
 0x10e   :  { %v208_v39 = vpop.trf.xlu0 }
 0x112   :  { %v209_v40 = vpop.trf.xlu0 }
 0x113   :  { %v361_v41 = vpack.c.bf16 %v209_v40, %v208_v39 }
 0x115   :  { %389 = vst [vmem:[#allocation2 + $0x10] sm:$0xff] %v361_v41  }
 0x116   :  { %v210_v42 = vpop.trf.xlu0 }
 0x11a   :  { %v211_v43 = vpop.trf.xlu0 }
 0x11b   :  { %v366_v44 = vpack.c.bf16 %v211_v43, %v210_v42 }
 0x11d   :  { %390 = vst [vmem:[#allocation2 + $0x18] sm:$0xff] %v366_v44  }
 0x11e   :  { %v212_v45 = vpop.trf.xlu0 }
 0x122   :  { %v213_v46 = vpop.trf.xlu0 }
 0x123   :  { %v371_v47 = vpack.c.bf16 %v213_v46, %v212_v45 }
 0x125   :  { %391 = vst [vmem:[#allocation2 + $0x20] sm:$0xff] %v371_v47  }
 0x126   :  { %v214_v48 = vpop.trf.xlu0 }
 0x12a   :  { %v215_v49 = vpop.trf.xlu0 }
 0x12b   :  { %v376_v50 = vpack.c.bf16 %v215_v49, %v214_v48 }
 0x12d   :  { %392 = vst [vmem:[#allocation2 + $0x28] sm:$0xff] %v376_v50  }
 0x12e   :  { %v216_v51 = vpop.trf.xlu0 }
 0x132   :  { %v217_v52 = vpop.trf.xlu0 }
 0x133   :  { %v381_v53 = vpack.c.bf16 %v217_v52, %v216_v51 }
 0x135   :  { %393 = vst [vmem:[#allocation2 + $0x30] sm:$0xff] %v381_v53  }
 0x136   :  { %v218_v54 = vpop.trf.xlu0 }
 0x13a   :  { %v219_v55 = vpop.trf.xlu0 }
 0x13b   :  { %v386_v56 = vpack.c.bf16 %v219_v55, %v218_v54 }
 0x13d   :  { %394 = vst [vmem:[#allocation2 + $0x38] sm:$0xff] %v386_v56  }
 0x13e   :  { %412 = shalt.err (!%p409_p4)
}
 0x13f   :  { %s425_s18 = smov 64   ;;  %s426_s1 = smov 4  }
 0x140   :  { %311 = dma.vmem_to_hbm [thread:$0]  %s306_s16, 1024, %s543_s2, [#allocation3], %s425_s18, %s425_s18, %s426_s1  }
 0x141   :  { %421 = dma.done.wait [#allocation3], 1024  }
 0x142   :  { %422 = vsyncadd [#allocation3], 4294966272 }
 0x143   :  { %315 = vsyncpa [#allocation3], 1 }

</bundles_post_ra>
